<compile_context>
chip_gen: v7x
topology: tpu7x:2x2x1
jax: 0.10.0
libtpu: 0.0.40
codegen_flags: <defaults>
</compile_context>

<pallas_src>
import functools
import numpy as np

import jax
import jax.numpy as jnp
from jax.experimental import pallas as pl
from jax.experimental.pallas import tpu as pltpu


# ----------------------------------------------------------------------------
# Pallas kernel: fused (patches @ W^T + bias)
# ----------------------------------------------------------------------------
def _patch_proj_kernel(p_ref, w_ref, b_ref, o_ref):
    # p_ref : (tn, K)   flattened patches tile
    # w_ref : (td, K)   weight tile, D-major (contract K of both operands)
    # b_ref : (1, td)   f32 bias tile
    # o_ref : (tn, td)  output tokens tile
    acc = jax.lax.dot_general(
        p_ref[...], w_ref[...],
        dimension_numbers=(((1,), (1,)), ((), ())),
        preferred_element_type=jnp.float32)
    o_ref[...] = (acc + b_ref[...]).astype(o_ref.dtype)


def _patch_proj_matmul(patches, w_dk, bias_f32, *, out_dtype,
                       tile_n=512, tile_d=512):
    """patches: (N, K), w_dk: (D, K), bias_f32: (D,) -> (N, D) via Pallas."""
    n, k = patches.shape
    d = w_dk.shape[0]

    # N tile: multiple of 8 (sublane) unless it covers the whole array.
    tn = n if n <= tile_n else tile_n
    # D tile: multiple of 128 (lane) unless it covers the whole array.
    td = d if (d <= tile_d or d % 128 != 0) else tile_d

    grid = (pl.cdiv(n, tn), pl.cdiv(d, td))

    bias2d = bias_f32.reshape(1, d)

    in_isz = np.dtype(patches.dtype).itemsize
    w_isz = np.dtype(w_dk.dtype).itemsize
    out_isz = np.dtype(out_dtype).itemsize

    cost = pl.CostEstimate(
        flops=2 * n * k * d,
        transcendentals=0,
        bytes_accessed=n * k * in_isz + d * k * w_isz + 4 * d + n * d * out_isz)

    # Double-buffered per-block VMEM footprint (+ headroom), capped for v7x.
    needed = 2 * (tn * k * in_isz + td * k * w_isz + td * 4 + tn * td * out_isz)
    vmem_limit = int(min(64 * 1024 * 1024,
                         max(32 * 1024 * 1024, needed + (8 << 20))))

    return pl.pallas_call(
        _patch_proj_kernel,
        out_shape=jax.ShapeDtypeStruct((n, d), out_dtype),
        grid_spec=pltpu.PrefetchScalarGridSpec(
            num_scalar_prefetch=0,
            grid=grid,
            in_specs=[
                pl.BlockSpec((tn, k), lambda i, j: (i, 0)),
                pl.BlockSpec((td, k), lambda i, j: (j, 0)),
                pl.BlockSpec((1, td), lambda i, j: (0, j)),
            ],
            out_specs=pl.BlockSpec((tn, td), lambda i, j: (i, j)),
        ),
        compiler_params=pltpu.CompilerParams(
            dimension_semantics=("parallel", "parallel"),
            vmem_limit_bytes=vmem_limit),
        cost_estimate=cost,
    )(patches, w_dk, bias2d)


# ----------------------------------------------------------------------------
# Module equivalent
# ----------------------------------------------------------------------------
class ProjectPatchesTokenizer:
    """JAX/Pallas port of fuse ProjectPatchesTokenizer (1D/2D/3D images)."""

    def __init__(self, *, image_shape, patch_shape, channels, token_dim,
                 strict=True, key=None, param_dtype=jnp.float32,
                 compute_dtype=jnp.bfloat16, out_dtype=None):
        assert len(image_shape) == len(patch_shape), \
            "patch and image must have identical dimensions"
        np_image = np.array(image_shape)
        np_patch = np.array(patch_shape)
        if strict:
            assert (np_image % np_patch == 0).all(), \
                "Image dimensions must be divisible by the patch size."
        self.image_shape = tuple(int(s) for s in image_shape)
        self.patch_shape = tuple(int(p) for p in patch_shape)
        self.image_dim = len(image_shape)
        assert self.image_dim in (1, 2, 3), "only supports 1D/2D/3D images"
        self.channels = channels
        self.token_dim = token_dim
        self.num_tokens = int(np.prod(np_image // np_patch))
        self.compute_dtype = compute_dtype
        self.out_dtype = out_dtype if out_dtype is not None else compute_dtype

        # Deterministic parameter init (mimics Conv weight/bias shapes).
        # weight: (token_dim, channels, *patch_shape), bias: (token_dim,)
        if key is None:
            key = jax.random.PRNGKey(0)
        wkey, bkey = jax.random.split(key)
        k = channels * int(np.prod(self.patch_shape))
        bound = 1.0 / np.sqrt(k)
        self.weight = jax.random.uniform(
            wkey, (token_dim, channels) + self.patch_shape,
            minval=-bound, maxval=bound, dtype=param_dtype)
        self.bias = jax.random.uniform(
            bkey, (token_dim,), minval=-bound, maxval=bound, dtype=param_dtype)

        # Cached at init: (D, K) compute-dtype weight (no per-call reshape/
        # transpose traffic) and f32 bias for the epilogue.
        self._k = k
        self.w_dk = self.weight.reshape(token_dim, k).astype(compute_dtype)
        self.bias_f32 = self.bias.astype(jnp.float32)

    # --- glue: non-overlapping patch extraction, flatten order = (C, *patch)
    def _extract_patches(self, x):
        b, c = x.shape[0], x.shape[1]
        pat = self.patch_shape
        grid = tuple(i // p for i, p in zip(self.image_shape, pat))

        if self.image_dim == 1:
            x = x.reshape(b, c, grid[0], pat[0])
            x = jnp.transpose(x, (0, 2, 1, 3))
        elif self.image_dim == 2:
            x = x.reshape(b, c, grid[0], pat[0], grid[1], pat[1])
            x = jnp.transpose(x, (0, 2, 4, 1, 3, 5))
        else:
            x = x.reshape(b, c, grid[0], pat[0], grid[1], pat[1],
                          grid[2], pat[2])
            x = jnp.transpose(x, (0, 2, 4, 6, 1, 3, 5, 7))

        return x.reshape(b * self.num_tokens, self._k)

    def __call__(self, x):
        assert x.ndim == self.image_dim + 2, \
            "input should be [batch, channels] + image_shape"
        b = x.shape[0]
        # Cast before extraction: halves the extraction-copy HBM traffic too.
        x = x.astype(self.compute_dtype)
        patches = self._extract_patches(x)                        # (B*T, K)
        out = _patch_proj_matmul(patches, self.w_dk, self.bias_f32,
                                 out_dtype=self.out_dtype)        # (B*T, D)
        return out.reshape(b, self.num_tokens, self.token_dim)


# ----------------------------------------------------------------------------
# Reference (pure JAX conv) for the 2D case, used as a correctness check.
# ----------------------------------------------------------------------------
def _reference_2d(x, weight, bias, patch_shape):
    y = jax.lax.conv_general_dilated(
        x, weight, window_strides=patch_shape, padding="VALID",
        dimension_numbers=("NCHW", "OIHW", "NCHW"))
    y = y + bias.reshape(1, -1, 1, 1)
    b, d = y.shape[0], y.shape[1]
    y = y.reshape(b, d, -1)                # flatten spatial
    return jnp.transpose(y, (0, 2, 1))     # (B, num_tokens, token_dim)


if __name__ == "__main__":
    key = jax.random.PRNGKey(0)
    kx, kp = jax.random.split(key)

    # Small 2D example: batch=2, channels=4, image 16x16, patch 4x4 -> 16
    # tokens per image; token_dim=128 keeps the output lane-dense.
    B, C, H, W = 2, 4, 16, 16
    patch = (4, 4)
    token_dim = 128

    x = jax.random.normal(kx, (B, C, H, W), dtype=jnp.float32)

    # f32 compute path: exact check against the f32 conv reference.
    tok_f32 = ProjectPatchesTokenizer(
        image_shape=(H, W), patch_shape=patch, channels=C,
        token_dim=token_dim, key=kp,
        compute_dtype=jnp.float32, out_dtype=jnp.float32)
    out_f32 = jax.block_until_ready(tok_f32(x))
    assert out_f32.shape == (B, tok_f32.num_tokens, token_dim), out_f32.shape

    ref = _reference_2d(x, tok_f32.weight, tok_f32.bias, patch)
    np.testing.assert_allclose(np.asarray(out_f32), np.asarray(ref),
                               rtol=1e-5, atol=1e-5)

    # bf16 compute path (default, perf config): loose check vs f32 reference.
    tok_bf16 = ProjectPatchesTokenizer(
        image_shape=(H, W), patch_shape=patch, channels=C,
        token_dim=token_dim, key=kp)     # compute_dtype=bf16, out_dtype=bf16
    out_bf16 = jax.block_until_ready(tok_bf16(x))
    assert out_bf16.shape == (B, tok_bf16.num_tokens, token_dim)
    np.testing.assert_allclose(np.asarray(out_bf16, dtype=np.float32),
                               np.asarray(ref), rtol=5e-2, atol=5e-2)

    print("KERNEL_OK")
</pallas_src>

<mosaic_0001>
module attributes {stable_mosaic.version = 11 : i64} {
  func.func @_patch_proj_kernel(%arg0: i32, %arg1: i32, %arg2: memref<32x64xf32, #tpu.memory_space<vmem>>, %arg3: memref<128x64xf32, #tpu.memory_space<vmem>>, %arg4: memref<1x128xf32, #tpu.memory_space<vmem>>, %arg5: memref<32x128xf32, #tpu.memory_space<vmem>>) attributes {dimension_semantics = [#tpu.dimension_semantics<parallel>, #tpu.dimension_semantics<parallel>], iteration_bounds = array<i64: 1, 1>, scalar_prefetch = 0 : i64, scratch_operands = 0 : i64, tpu.core_type = #tpu.core_type<tc>, window_params = [{transform_indices = @transform_0, window_bounds = array<i64: 32, 64>}, {transform_indices = @transform_1, window_bounds = array<i64: 128, 64>}, {transform_indices = @transform_2, window_bounds = array<i64: 1, 128>}, {transform_indices = @transform_3, window_bounds = array<i64: 32, 128>}]} {
    %c0 = arith.constant 0 : index
    %c0_0 = arith.constant 0 : index
    %0 = vector.load %arg2[%c0, %c0_0] : memref<32x64xf32, #tpu.memory_space<vmem>>, vector<32x64xf32>
    %c0_1 = arith.constant 0 : index
    %c0_2 = arith.constant 0 : index
    %1 = vector.load %arg3[%c0_1, %c0_2] : memref<128x64xf32, #tpu.memory_space<vmem>>, vector<128x64xf32>
    %cst = arith.constant dense<0.000000e+00> : vector<32x128xf32>
    %2 = tpu.matmul %0, %1, %cst {dimension_numbers = #tpu.dot_dimension_numbers<[1], [1], [0], [0], [0, 0, 1, 0], [], []>} : vector<32x64xf32>, vector<128x64xf32>, vector<32x128xf32> -> vector<32x128xf32>
    %c0_3 = arith.constant 0 : index
    %c0_4 = arith.constant 0 : index
    %3 = vector.load %arg4[%c0_3, %c0_4] : memref<1x128xf32, #tpu.memory_space<vmem>>, vector<1x128xf32>
    %4 = vector.broadcast %3 : vector<1x128xf32> to vector<32x128xf32>
    %5 = arith.addf %2, %4 : vector<32x128xf32>
    %c0_5 = arith.constant 0 : index
    %c0_6 = arith.constant 0 : index
    %6 = vector.load %arg5[%c0_5, %c0_6] : memref<32x128xf32, #tpu.memory_space<vmem>>, vector<32x128xf32>
    tpu.vector_store %arg5[%c0_5, %c0_6], %5 {strides = array<i32>} : memref<32x128xf32, #tpu.memory_space<vmem>>, vector<32x128xf32>,
    return
  }
  func.func @transform_0(%arg0: i32, %arg1: i32) -> (i32, i32) {
    %c0_i32 = arith.constant 0 : i32
    %c0_i32_0 = arith.constant 0 : i32
    return %arg0, %c0_i32 : i32, i32
  }
  func.func @transform_1(%arg0: i32, %arg1: i32) -> (i32, i32) {
    %c0_i32 = arith.constant 0 : i32
    %c0_i32_0 = arith.constant 0 : i32
    return %arg1, %c0_i32 : i32, i32
  }
  func.func @transform_2(%arg0: i32, %arg1: i32) -> (i32, i32) {
    %c0_i32 = arith.constant 0 : i32
    %c0_i32_0 = arith.constant 0 : i32
    return %c0_i32, %arg1 : i32, i32
  }
  func.func @transform_3(%arg0: i32, %arg1: i32) -> (i32, i32) {
    %c0_i32 = arith.constant 0 : i32
    return %arg0, %arg1 : i32, i32
  }
}

</mosaic_0001>

<bundles_post_ra>
// kernel: tpu_custom_call.1
= control target key start
LH: loop header
LB: loop body
LE: loop exit
PB: predicated region body
PF: predicated region fallthrough
CT: control target
= control target key end

     0   :  { %vm42_vm0 = vcmask 523264   ;;  %s550_s0 = inlined_call_operand.vmem [shape: f32[32,64], index: 0, kind: input, shape index: {}]   ;;  %s551_s1 = inlined_call_operand.vmem [shape: f32[128,64], index: 1, kind: input, shape index: {}]   ;;  %s552_s2 = inlined_call_operand.vmem [shape: f32[1,128], index: 2, kind: input, shape index: {}]   ;;  %s553_s3 = inlined_call_operand.hbm [shape: f32[32,128], index: 3, kind: output, shape index: {}]  }
   0x1   :  { %v19_v0 = vld [vmem:[%s551_s1] sm:$0xff]  ;;  %v20_v1 = vld [vmem:[%s551_s1 + $0x8] sm:$0xff]  ;;  %v21_v2 = vld [vmem:[%s551_s1 + $0x10] sm:$0xff] }
   0x2   :  { %v287_v3 = vpack.c.bf16 %v20_v1, %v19_v0  ;;  %vm412_vm1 = vmpackc.low %vm42_vm0, %vm42_vm0  ;;  %v22_v5 = vld [vmem:[%s551_s1 + $0x18] sm:$0xff]  ;;  %v15_v7 = vld [vmem:[%s550_s0] sm:$0xff] }
   0x3   :  { %v293_v6 = vpack.c.bf16 %v22_v5, %v21_v2  ;;  %v23_v8 = vld [vmem:[%s551_s1 + $0x20] sm:$0xff]  ;;  %v24_v9 = vld [vmem:[%s551_s1 + $0x28] sm:$0xff]  ;;  %281 = vmatprep.mubr.msk.f32.mxu0 %vm42_vm0, %v15_v7  ;;  %v17_v10 = vld [vmem:[%s550_s0 + $0x10] sm:$0xff] }
   0x4   :  { %289 = vmatprep.subr.msk.bf16.mxu0 %vm412_vm1, %v287_v3  ;;  %335 = vmatprep.subr.msk.bf16.mxu1 %vm412_vm1, %v287_v3 }
   0x5   :  { %292 = vmatpush3.bf16.xpose.msk.msra.mxu0 %vm412_vm1, %v287_v3  ;;  %343 = vmatpush3.bf16.xpose.msk.msra.mxu1 %vm412_vm1, %v287_v3 }
   0x6   :  { %295 = vmatprep.subr.msk.bf16.mxu0 %vm412_vm1, %v293_v6  ;;  %336 = vmatprep.subr.msk.bf16.mxu1 %vm412_vm1, %v293_v6 }
   0x7   :  { %284 = vmatprep.mubr.msk.f32.mxu1 %vm42_vm0, %v17_v10 }
   0x8   :  { %8 = vsyncpa [#allocation3], 0  ;;  %v299_v11 = vpack.c.bf16 %v24_v9, %v23_v8  ;;  %v25_v12 = vld [vmem:[%s551_s1 + $0x30] sm:$0xff]  ;;  %v26_v13 = vld [vmem:[%s551_s1 + $0x38] sm:$0xff]  ;;  %s378_s26 = smov [#allocation2]  }
   0x9   :  { %v305_v14 = vpack.c.bf16 %v26_v13, %v25_v12  ;;  %v27_v15 = vld [vmem:[%s551_s1 + $0x40] sm:$0xff]  ;;  %v28_v16 = vld [vmem:[%s551_s1 + $0x48] sm:$0xff]  ;;  %v29_v18 = vld [vmem:[%s551_s1 + $0x50] sm:$0xff]  ;;  %s197_s27 = sshll.u32 %s378_s26, 4  ;;  %s198_s27 = int_to_ptr.vmem [resolvable:$true] %s197_s27 }
   0xa   :  { %v311_v17 = vpack.c.bf16 %v28_v16, %v27_v15  ;;  %v30_v19 = vld [vmem:[%s551_s1 + $0x58] sm:$0xff]  ;;  %v31_v21 = vld [vmem:[%s551_s1 + $0x60] sm:$0xff]  ;;  %v32_v22 = vld [vmem:[%s551_s1 + $0x68] sm:$0xff]  ;;  %p359_p1 = scmp.lt.s32.totalorder %s198_s27, %s198_s27 }
   0xb   :  { %v317_v20 = vpack.c.bf16 %v30_v19, %v29_v18  ;;  %v323_v23 = vpack.c.bf16 %v32_v22, %v31_v21  ;;  %v33_v24 = vld [vmem:[%s551_s1 + $0x70] sm:$0xff]  ;;  %v34_v25 = vld [vmem:[%s551_s1 + $0x78] sm:$0xff]  ;;  %v16_v27 = vld [vmem:[%s550_s0 + $0x8] sm:$0xff] }
   0xc   :  { %v329_v26 = vpack.c.bf16 %v34_v25, %v33_v24  ;;  %v18_v28 = vld [vmem:[%s550_s0 + $0x18] sm:$0xff]  ;;  %v208_v29 = vld [vmem:[%s552_s2] ss:$0 sm:$0xff]  ;;  %s354_s0 = scalar_lea.vmem %s198_s27, 512 }
   0xd   :  { %298 = vmatpush3.bf16.xpose.msk.msra.mxu0 %vm412_vm1, %v293_v6  ;;  %344 = vmatpush3.bf16.xpose.msk.msra.mxu1 %vm412_vm1, %v293_v6  ;;  %p355_p0 = scmp.ne.s32.totalorder %s198_s27, %s354_s0  ;;  %p360_p2 = scmp.lt.s32.totalorder %s354_s0, %s354_s0 }
   0xe   :  { %301 = vmatprep.subr.msk.bf16.mxu0 %vm412_vm1, %v299_v11  ;;  %337 = vmatprep.subr.msk.bf16.mxu1 %vm412_vm1, %v299_v11 }
   0xf   :  { %p361_p3 = por %p360_p2, %p359_p1 }
  0x11   :  { %p362_p4 = pnand %p361_p3, %p355_p0 }
  0x15   :  { %304 = vmatpush3.bf16.xpose.msk.msra.mxu0 %vm412_vm1, %v299_v11  ;;  %345 = vmatpush3.bf16.xpose.msk.msra.mxu1 %vm412_vm1, %v299_v11 }
  0x16   :  { %307 = vmatprep.subr.msk.bf16.mxu0 %vm412_vm1, %v305_v14  ;;  %338 = vmatprep.subr.msk.bf16.mxu1 %vm412_vm1, %v305_v14 }
  0x1d   :  { %310 = vmatpush3.bf16.xpose.msk.msra.mxu0 %vm412_vm1, %v305_v14  ;;  %346 = vmatpush3.bf16.xpose.msk.msra.mxu1 %vm412_vm1, %v305_v14 }
  0x1e   :  { %313 = vmatprep.subr.msk.bf16.mxu0 %vm412_vm1, %v311_v17  ;;  %339 = vmatprep.subr.msk.bf16.mxu1 %vm412_vm1, %v311_v17 }
  0x25   :  { %316 = vmatpush3.bf16.xpose.msk.msra.mxu0 %vm412_vm1, %v311_v17  ;;  %347 = vmatpush3.bf16.xpose.msk.msra.mxu1 %vm412_vm1, %v311_v17 }
  0x26   :  { %319 = vmatprep.subr.msk.bf16.mxu0 %vm412_vm1, %v317_v20  ;;  %340 = vmatprep.subr.msk.bf16.mxu1 %vm412_vm1, %v317_v20 }
  0x2d   :  { %322 = vmatpush3.bf16.xpose.msk.msra.mxu0 %vm412_vm1, %v317_v20  ;;  %348 = vmatpush3.bf16.xpose.msk.msra.mxu1 %vm412_vm1, %v317_v20 }
  0x2e   :  { %325 = vmatprep.subr.msk.bf16.mxu0 %vm412_vm1, %v323_v23  ;;  %341 = vmatprep.subr.msk.bf16.mxu1 %vm412_vm1, %v323_v23 }
  0x35   :  { %328 = vmatpush3.bf16.xpose.msk.msra.mxu0 %vm412_vm1, %v323_v23  ;;  %349 = vmatpush3.bf16.xpose.msk.msra.mxu1 %vm412_vm1, %v323_v23 }
  0x36   :  { %331 = vmatprep.subr.msk.bf16.mxu0 %vm412_vm1, %v329_v26  ;;  %342 = vmatprep.subr.msk.bf16.mxu1 %vm412_vm1, %v329_v26 }
  0x3d   :  { %334 = vmatpush3.bf16.xpose.msk.msra.mxu0 %vm412_vm1, %v329_v26  ;;  %350 = vmatpush3.bf16.xpose.msk.msra.mxu1 %vm412_vm1, %v329_v26 }
  0x44   :  { %282 = vmatmul.mubr.msk.f32.vlgmr.msra.gmra.mrb[0].mxu0 %vm42_vm0, %v16_v27  ;;  %285 = vmatmul.mubr.msk.f32.vlgmr.msra.gmra.mrb[0].mxu1 %vm42_vm0, %v18_v28 }
 0x117   :  { %v283_v30 = vpop.f32.mrb[0].mxu0  ;;  %v286_v31 = vpop.f32.mrb[0].mxu1 }
 0x118   :  { %v175_v32 = vadd.f32 %v283_v30, %v208_v29  ;;  %v185_v33 = vadd.f32 %v286_v31, %v208_v29  ;;  %v169_v34 = vpop.f32.mrb[1].mxu0  ;;  %v179_v35 = vpop.f32.mrb[1].mxu1 }
 0x119   :  { %v170_v36 = vadd.f32 %v208_v29, %v169_v34  ;;  %v180_v37 = vadd.f32 %v208_v29, %v179_v35 }
 0x11a   :  { %189 = vst [vmem:[#allocation2 + $0x8] sm:$0xff] %v175_v32  ;;  %191 = vst [vmem:[#allocation2 + $0x18] sm:$0xff] %v185_v33 }
 0x11b   :  { %188 = vst [vmem:[#allocation2] sm:$0xff] %v170_v36  ;;  %190 = vst [vmem:[#allocation2 + $0x10] sm:$0xff] %v180_v37 }
 0x11c   :  { %365 = shalt.err (!%p362_p4)
}
 0x11d   :  { %s366_s29 = scalar_lea.hbm %s553_s3, 512 }
 0x11e   :  { %p367_p5 = scmp.ne.s32.totalorder %s553_s3, %s366_s29  ;;  %p370_p6 = scmp.lt.u32.totalorder %s366_s29, %s553_s3 }
 0x120   :  { %p372_p7 = pnand %p370_p6, %p367_p5 }
 0x122   :  { %375 = shalt.err (!%p372_p7)
}
 0x123   :  { %s379_s7 = smov 128   ;;  %s380_s8 = smov 8  }
 0x124   :  { %203 = dma.vmem_to_hbm [thread:$0]  %s198_s27, 512, %s553_s3, [#allocation3], %s379_s7, %s379_s7, %s380_s8  }
 0x125   :  { %376 = dma.done.wait [#allocation3], 512  }
 0x126   :  { %377 = vsyncadd [#allocation3], 4294966784 }
 0x127   :  { %207 = vsyncpa [#allocation3], 1 }

</bundles_post_ra>
